<compile_context>
chip_gen: v7x
topology: tpu7x:2x2x1
jax: 0.10.0
libtpu: 0.0.40
codegen_flags: <defaults>
</compile_context>

<pallas_src>
import functools

import numpy as np
import jax
import jax.numpy as jnp
from jax import lax
from jax.experimental import pallas as pl
from jax.experimental.pallas import tpu as pltpu

EPS = 1e-5
_SUB = 8      # sublane tile
_LANE = 128   # lane tile


def _round_up(x, m):
    return (x + m - 1) // m * m


# ----------------------------------------------------------------------------
# Fused kernel: conv1 (folded depthwise*pointwise) -> BN1 -> conv2 -> BN2
# Layout everywhere: (channels on sublanes, padded-flat pixels on lanes).
# ----------------------------------------------------------------------------
def band_space_kernel(x_ref, prm_ref, msk_ref, out1_ref, out2_ref, *,
                      kb, ks, wp, c_band, c_space, k1, k2, m1, m2, eps):
    wl = x_ref.shape[1]                     # lane-padded flat pixel count (mult. of 128)

    # ---- unpack the single parameter slab (one DMA instead of eight) ----
    prm = prm_ref[...]
    w1 = prm[:c_band, 0:k1]                 # (c_band, kb*kb*8)   folded dw*pw weight
    w2 = prm[:c_space, k1:k1 + k2]          # (c_space, ks*ks*c_band)
    sc = k1 + k2
    b1 = prm[:c_band, sc + 0:sc + 1]
    g1 = prm[:c_band, sc + 1:sc + 2]
    be1 = prm[:c_band, sc + 2:sc + 3]
    b2 = prm[:c_space, sc + 3:sc + 4]
    g2 = prm[:c_space, sc + 4:sc + 5]
    be2 = prm[:c_space, sc + 5:sc + 6]

    valid1 = msk_ref[0:1, :] != 0.0         # (1, wl) valid conv1-output columns (512)
    valid2 = msk_ref[1:2, :] != 0.0         # (1, wl) valid conv2-output columns (392)

    x = x_ref[...]                          # (8, wl) channel-major, lane-dense, padded

    def taps(src, k):
        # shifted[:, p] = src[:, p + i*wp + j]  -- lane shift on the XLU (overlaps
        # VPU/MXU).  Wrap columns only ever land on masked / cropped positions.
        pieces = []
        for i in range(k):
            for j in range(k):
                d = i * wp + j
                pieces.append(src if d == 0 else pltpu.roll(src, shift=wl - d, axis=1))
        # every piece is exactly one sublane tile tall -> aligned, relayout-free stack
        return jnp.concatenate(pieces, axis=0)          # (k*k*C, wl)

    # ---- conv1: one im2col matmul, (c_band, K1) x (K1, wl), no RHS transpose ----
    patches1 = taps(x, kb)
    z1 = jnp.dot(w1, patches1, preferred_element_type=jnp.float32) + b1   # (c_band, wl)

    # ---- BatchNorm 1 (masked, two-pass variance, rsqrt on the EUP) ----
    inv1 = 1.0 / m1
    mean1 = jnp.sum(jnp.where(valid1, z1, 0.0), axis=1, keepdims=True) * inv1
    c1 = z1 - mean1
    var1 = jnp.sum(jnp.where(valid1, c1 * c1, 0.0), axis=1, keepdims=True) * inv1
    y1 = c1 * (lax.rsqrt(var1 + eps) * g1) + be1
    out1_ref[...] = y1                                     # full lane-dense store

    # ---- conv2: taps of y1 in the SAME padded-flat space (no transpose/reshape) ----
    patches2 = taps(y1, ks)
    z2 = jnp.dot(w2, patches2, preferred_element_type=jnp.float32) + b2   # (c_space, wl)

    # ---- BatchNorm 2 ----
    inv2 = 1.0 / m2
    mean2 = jnp.sum(jnp.where(valid2, z2, 0.0), axis=1, keepdims=True) * inv2
    c2 = z2 - mean2
    var2 = jnp.sum(jnp.where(valid2, c2 * c2, 0.0), axis=1, keepdims=True) * inv2
    out2_ref[...] = c2 * (lax.rsqrt(var2 + eps) * g2) + be2


# ----------------------------------------------------------------------------
# Wrapper: layout glue (transpose / pad / crop) + gridless pallas_call
# ----------------------------------------------------------------------------
def _valid_mask(n, hp, wp, hv, wv, wl):
    """1.0 where the padded-flat column is a valid conv output (top-left indexing)."""
    row = (jnp.arange(hp) < hv)[:, None] & (jnp.arange(wp) < wv)[None, :]
    m = jnp.tile(row.astype(jnp.float32)[None], (n, 1, 1)).reshape(1, n * hp * wp)
    return jnp.pad(m, ((0, 0), (0, wl - n * hp * wp)))


def band_space_forward(x_nchw, p, *, k_band, k_space, pad):
    n, c_in, h, w = x_nchw.shape
    hp, wp = h + 2 * pad, w + 2 * pad
    ho, wo = hp - k_band + 1, wp - k_band + 1
    h2, w2 = ho - k_space + 1, wo - k_space + 1
    c_band = p["g1"].shape[0]
    c_space = p["g2"].shape[0]
    nflat = n * hp * wp
    wl = _round_up(nflat, _LANE)
    m1 = n * ho * wo
    m2 = n * h2 * w2
    k1 = k_band * k_band * _SUB
    k2 = k_space * k_space * c_band

    # channel-major, spatially zero-padded, channel-padded-to-8, lane-dense input
    x_cm = jnp.transpose(x_nchw.astype(jnp.float32), (1, 0, 2, 3))        # (c_in,n,h,w)
    x_cm = jnp.pad(x_cm, ((0, _SUB - c_in), (0, 0), (pad, pad), (pad, pad)))
    x_flat = jnp.pad(x_cm.reshape(_SUB, nflat), ((0, 0), (0, wl - nflat)))  # (8, wl)

    masks = jnp.concatenate([_valid_mask(n, hp, wp, ho, wo, wl),
                             _valid_mask(n, hp, wp, h2, w2, wl)], axis=0)   # (2, wl)

    out1_f, out2_f = pl.pallas_call(
        functools.partial(band_space_kernel, kb=k_band, ks=k_space, wp=wp,
                          c_band=c_band, c_space=c_space, k1=k1, k2=k2,
                          m1=float(m1), m2=float(m2), eps=EPS),
        out_shape=(jax.ShapeDtypeStruct((c_band, wl), jnp.float32),
                   jax.ShapeDtypeStruct((c_space, wl), jnp.float32)),
    )(x_flat, p["slab"], masks)

    # crop the padded-flat slabs back to NCHW (cheap glue outside the kernel)
    out1 = out1_f[:, :nflat].reshape(c_band, n, hp, wp)[:, :, :ho, :wo]
    out2 = out2_f[:, :nflat].reshape(c_space, n, hp, wp)[:, :, :h2, :w2]
    return jnp.transpose(out1, (1, 0, 2, 3)), jnp.transpose(out2, (1, 0, 2, 3))


# ----------------------------------------------------------------------------
# Deterministic parameter init (PyTorch layouts) + packed kernel-side slab
# ----------------------------------------------------------------------------
def init_params(key, c_in, c_band, c_space, k_band, k_space):
    kk = jax.random.split(key, 10)
    s = 0.1
    p = {}
    p["w_dw"] = s * jax.random.normal(kk[0], (c_in, 1, k_band, k_band), jnp.float32)
    p["b_dw"] = s * jax.random.normal(kk[1], (c_in,), jnp.float32)
    p["w_pw"] = s * jax.random.normal(kk[2], (c_band, c_in, 1, 1), jnp.float32)
    p["b_pw"] = s * jax.random.normal(kk[3], (c_band,), jnp.float32)
    p["w_sp"] = s * jax.random.normal(kk[4], (c_space, c_band, k_space, k_space), jnp.float32)
    p["b_sp"] = s * jax.random.normal(kk[5], (c_space,), jnp.float32)
    p["g1"] = 1.0 + s * jax.random.normal(kk[6], (c_band,), jnp.float32)
    p["be1"] = s * jax.random.normal(kk[7], (c_band,), jnp.float32)
    p["g2"] = 1.0 + s * jax.random.normal(kk[8], (c_space,), jnp.float32)
    p["be2"] = s * jax.random.normal(kk[9], (c_space,), jnp.float32)

    assert c_in <= _SUB and c_band <= _SUB and c_space <= _SUB  # toy-size packing

    # fold depthwise+pointwise: W_eff[o, ij, c] = w_dw[c, ij] * w_pw[o, c]
    w_pw2 = p["w_pw"][:, :, 0, 0]                                  # (c_band, c_in)
    w_dw_taps = p["w_dw"][:, 0].reshape(c_in, k_band * k_band)     # (c_in, kb*kb)
    w_eff = w_dw_taps.T[None, :, :] * w_pw2[:, None, :]            # (c_band, kb*kb, c_in)
    w_eff = jnp.pad(w_eff, ((0, 0), (0, 0), (0, _SUB - c_in)))     # channel pad -> 8
    w1 = w_eff.reshape(c_band, k_band * k_band * _SUB)             # K idx = ij*8 + c
    b1 = p["b_pw"] + w_pw2 @ p["b_dw"]                             # folded bias
    # space conv weight, K idx = ij*c_band + c
    w2 = jnp.transpose(p["w_sp"], (0, 2, 3, 1)).reshape(c_space, k_space * k_space * c_band)

    k1 = k_band * k_band * _SUB
    k2 = k_space * k_space * c_band
    slab = jnp.zeros((_SUB, k1 + k2 + 6), jnp.float32)
    slab = slab.at[:c_band, 0:k1].set(w1)
    slab = slab.at[:c_space, k1:k1 + k2].set(w2)
    sc = k1 + k2
    slab = slab.at[:c_band, sc + 0].set(b1)
    slab = slab.at[:c_band, sc + 1].set(p["g1"])
    slab = slab.at[:c_band, sc + 2].set(p["be1"])
    slab = slab.at[:c_space, sc + 3].set(p["b_sp"])
    slab = slab.at[:c_space, sc + 4].set(p["g2"])
    slab = slab.at[:c_space, sc + 5].set(p["be2"])
    p["slab"] = slab
    return p


# ----------------------------------------------------------------------------
# Pure-JAX reference mirroring the PyTorch module (for verification)
# ----------------------------------------------------------------------------
def _bn_nchw(x, g, b):
    mean = jnp.mean(x, axis=(0, 2, 3), keepdims=True)
    var = jnp.mean((x - mean) ** 2, axis=(0, 2, 3), keepdims=True)
    return (x - mean) / jnp.sqrt(var + EPS) * g[None, :, None, None] + b[None, :, None, None]


def reference(x, p, *, k_band, k_space, pad):
    dn = ("NCHW", "OIHW", "NCHW")
    hi = lax.Precision.HIGHEST
    dw = lax.conv_general_dilated(x, p["w_dw"], (1, 1), [(pad, pad), (pad, pad)],
                                  feature_group_count=x.shape[1],
                                  dimension_numbers=dn, precision=hi)
    dw = dw + p["b_dw"][None, :, None, None]
    pw = lax.conv_general_dilated(dw, p["w_pw"], (1, 1), "VALID",
                                  dimension_numbers=dn, precision=hi)
    pw = pw + p["b_pw"][None, :, None, None]
    out1 = _bn_nchw(pw, p["g1"], p["be1"])
    sp = lax.conv_general_dilated(out1, p["w_sp"], (1, 1), "VALID",
                                  dimension_numbers=dn, precision=hi)
    sp = sp + p["b_sp"][None, :, None, None]
    out2 = _bn_nchw(sp, p["g2"], p["be2"])
    return out1, out2


if __name__ == "__main__":
    key = jax.random.PRNGKey(0)
    kx, kp = jax.random.split(key)

    N, C_IN, H, W = 2, 4, 16, 16
    C_BAND, C_SPACE = 8, 8
    K_BAND, K_SPACE, PAD = 3, 3, 1

    x = jax.random.normal(kx, (N, C_IN, H, W), jnp.float32)
    params = init_params(kp, C_IN, C_BAND, C_SPACE, K_BAND, K_SPACE)

    out1, out2 = band_space_forward(x, params, k_band=K_BAND, k_space=K_SPACE, pad=PAD)
    jax.block_until_ready((out1, out2))

    ref1, ref2 = reference(x, params, k_band=K_BAND, k_space=K_SPACE, pad=PAD)
    assert out1.shape == (N, C_BAND, H, W), out1.shape
    assert out2.shape == (N, C_SPACE, H - K_SPACE + 1, W - K_SPACE + 1), out2.shape
    assert np.allclose(np.asarray(out1), np.asarray(ref1), atol=3e-2, rtol=3e-2)
    assert np.allclose(np.asarray(out2), np.asarray(ref2), atol=3e-2, rtol=3e-2)

    print("KERNEL_OK")
</pallas_src>

<mosaic_0001>
module attributes {stable_mosaic.version = 11 : i64} {
  func.func @band_space_kernel(%arg0: memref<8x768xf32, #tpu.memory_space<vmem>>, %arg1: memref<8x150xf32, #tpu.memory_space<vmem>>, %arg2: memref<2x768xf32, #tpu.memory_space<vmem>>, %arg3: memref<8x768xf32, #tpu.memory_space<vmem>>, %arg4: memref<8x768xf32, #tpu.memory_space<vmem>>) attributes {dimension_semantics = [], scalar_prefetch = 0 : i64, scratch_operands = 0 : i64, tpu.core_type = #tpu.core_type<tc>} {
    %c0 = arith.constant 0 : index
    %c0_0 = arith.constant 0 : index
    %0 = vector.load %arg1[%c0, %c0_0] : memref<8x150xf32, #tpu.memory_space<vmem>>, vector<8x150xf32>
    %1 = vector.extract_strided_slice %0 {offsets = [0, 0], sizes = [8, 72], strides = [1, 1]} : vector<8x150xf32> to vector<8x72xf32>
    %2 = vector.extract_strided_slice %0 {offsets = [0, 72], sizes = [8, 72], strides = [1, 1]} : vector<8x150xf32> to vector<8x72xf32>
    %3 = vector.extract_strided_slice %0 {offsets = [0, 144], sizes = [8, 1], strides = [1, 1]} : vector<8x150xf32> to vector<8x1xf32>
    %4 = vector.extract_strided_slice %0 {offsets = [0, 145], sizes = [8, 1], strides = [1, 1]} : vector<8x150xf32> to vector<8x1xf32>
    %5 = vector.extract_strided_slice %0 {offsets = [0, 146], sizes = [8, 1], strides = [1, 1]} : vector<8x150xf32> to vector<8x1xf32>
    %6 = vector.extract_strided_slice %0 {offsets = [0, 147], sizes = [8, 1], strides = [1, 1]} : vector<8x150xf32> to vector<8x1xf32>
    %7 = vector.extract_strided_slice %0 {offsets = [0, 148], sizes = [8, 1], strides = [1, 1]} : vector<8x150xf32> to vector<8x1xf32>
    %8 = vector.extract_strided_slice %0 {offsets = [0, 149], sizes = [8, 1], strides = [1, 1]} : vector<8x150xf32> to vector<8x1xf32>
    %c0_1 = arith.constant 0 : index
    %c0_2 = arith.constant 0 : index
    %9 = vector.load %arg2[%c0_1, %c0_2] : memref<2x768xf32, #tpu.memory_space<vmem>>, vector<1x768xf32>
    %cst = arith.constant 0.000000e+00 : f32
    %10 = vector.broadcast %cst : f32 to vector<1x768xf32>
    %11 = arith.cmpf one, %9, %10 : vector<1x768xf32>
    %c1 = arith.constant 1 : index
    %c0_3 = arith.constant 0 : index
    %12 = vector.load %arg2[%c1, %c0_3] : memref<2x768xf32, #tpu.memory_space<vmem>>, vector<1x768xf32>
    %cst_4 = arith.constant 0.000000e+00 : f32
    %13 = vector.broadcast %cst_4 : f32 to vector<1x768xf32>
    %14 = arith.cmpf one, %12, %13 : vector<1x768xf32>
    %c0_5 = arith.constant 0 : index
    %c0_6 = arith.constant 0 : index
    %15 = vector.load %arg0[%c0_5, %c0_6] : memref<8x768xf32, #tpu.memory_space<vmem>>, vector<8x768xf32>
    %c767_i32 = arith.constant 767 : i32
    %16 = tpu.dynamic_rotate %15 by %c767_i32 dim 1 : vector<8x768xf32>, i32 -> vector<8x768xf32>
    %c766_i32 = arith.constant 766 : i32
    %17 = tpu.dynamic_rotate %15 by %c766_i32 dim 1 : vector<8x768xf32>, i32 -> vector<8x768xf32>
    %c750_i32 = arith.constant 750 : i32
    %18 = tpu.dynamic_rotate %15 by %c750_i32 dim 1 : vector<8x768xf32>, i32 -> vector<8x768xf32>
    %c749_i32 = arith.constant 749 : i32
    %19 = tpu.dynamic_rotate %15 by %c749_i32 dim 1 : vector<8x768xf32>, i32 -> vector<8x768xf32>
    %c748_i32 = arith.constant 748 : i32
    %20 = tpu.dynamic_rotate %15 by %c748_i32 dim 1 : vector<8x768xf32>, i32 -> vector<8x768xf32>
    %c732_i32 = arith.constant 732 : i32
    %21 = tpu.dynamic_rotate %15 by %c732_i32 dim 1 : vector<8x768xf32>, i32 -> vector<8x768xf32>
    %c731_i32 = arith.constant 731 : i32
    %22 = tpu.dynamic_rotate %15 by %c731_i32 dim 1 : vector<8x768xf32>, i32 -> vector<8x768xf32>
    %c730_i32 = arith.constant 730 : i32
    %23 = tpu.dynamic_rotate %15 by %c730_i32 dim 1 : vector<8x768xf32>, i32 -> vector<8x768xf32>
    %24 = tpu.concatenate %15, %16, %17, %18, %19, %20, %21, %22, %23 in 0 : vector<8x768xf32>, vector<8x768xf32>, vector<8x768xf32>, vector<8x768xf32>, vector<8x768xf32>, vector<8x768xf32>, vector<8x768xf32>, vector<8x768xf32>, vector<8x768xf32> -> vector<72x768xf32>
    %cst_7 = arith.constant dense<0.000000e+00> : vector<8x768xf32>
    %25 = tpu.matmul %1, %24, %cst_7 {dimension_numbers = #tpu.dot_dimension_numbers<[1], [0], [0], [1], [0, 0, 1, 1], [], []>} : vector<8x72xf32>, vector<72x768xf32>, vector<8x768xf32> -> vector<8x768xf32>
    %26 = vector.broadcast %3 : vector<8x1xf32> to vector<8x768xf32>
    %27 = arith.addf %25, %26 : vector<8x768xf32>
    %cst_8 = arith.constant 0.000000e+00 : f32
    %28 = vector.shape_cast %11 : vector<1x768xi1> to vector<1x768xi1>
    %29 = vector.broadcast %28 : vector<1x768xi1> to vector<8x768xi1>
    %30 = vector.broadcast %cst_8 : f32 to vector<8x768xf32>
    %31 = arith.select %29, %27, %30 : vector<8x768xi1>, vector<8x768xf32>
    %cst_9 = arith.constant dense<0.000000e+00> : vector<8xf32>
    %32 = vector.multi_reduction <add>, %31, %cst_9 [1] : vector<8x768xf32> to vector<8xf32>
    %33 = vector.shape_cast %32 : vector<8xf32> to vector<8x1xf32>
    %cst_10 = arith.constant 0.001953125 : f32
    %34 = vector.broadcast %cst_10 : f32 to vector<8x1xf32>
    %35 = arith.mulf %33, %34 : vector<8x1xf32>
    %36 = vector.broadcast %35 : vector<8x1xf32> to vector<8x768xf32>
    %37 = arith.subf %27, %36 : vector<8x768xf32>
    %38 = arith.mulf %37, %37 : vector<8x768xf32>
    %cst_11 = arith.constant 0.000000e+00 : f32
    %39 = vector.shape_cast %11 : vector<1x768xi1> to vector<1x768xi1>
    %40 = vector.broadcast %39 : vector<1x768xi1> to vector<8x768xi1>
    %41 = vector.broadcast %cst_11 : f32 to vector<8x768xf32>
    %42 = arith.select %40, %38, %41 : vector<8x768xi1>, vector<8x768xf32>
    %cst_12 = arith.constant dense<0.000000e+00> : vector<8xf32>
    %43 = vector.multi_reduction <add>, %42, %cst_12 [1] : vector<8x768xf32> to vector<8xf32>
    %44 = vector.shape_cast %43 : vector<8xf32> to vector<8x1xf32>
    %cst_13 = arith.constant 0.001953125 : f32
    %45 = vector.broadcast %cst_13 : f32 to vector<8x1xf32>
    %46 = arith.mulf %44, %45 : vector<8x1xf32>
    %cst_14 = arith.constant 9.99999974E-6 : f32
    %47 = vector.broadcast %cst_14 : f32 to vector<8x1xf32>
    %48 = arith.addf %46, %47 : vector<8x1xf32>
    %49 = math.rsqrt %48 : vector<8x1xf32>
    %50 = arith.mulf %49, %4 : vector<8x1xf32>
    %51 = vector.broadcast %50 : vector<8x1xf32> to vector<8x768xf32>
    %52 = arith.mulf %37, %51 : vector<8x768xf32>
    %53 = vector.broadcast %5 : vector<8x1xf32> to vector<8x768xf32>
    %54 = arith.addf %52, %53 : vector<8x768xf32>
    %c0_15 = arith.constant 0 : index
    %c0_16 = arith.constant 0 : index
    %55 = vector.load %arg3[%c0_15, %c0_16] : memref<8x768xf32, #tpu.memory_space<vmem>>, vector<8x768xf32>
    tpu.vector_store %arg3[%c0_15, %c0_16], %54 {strides = array<i32>} : memref<8x768xf32, #tpu.memory_space<vmem>>, vector<8x768xf32>,
    %c767_i32_17 = arith.constant 767 : i32
    %56 = tpu.dynamic_rotate %54 by %c767_i32_17 dim 1 : vector<8x768xf32>, i32 -> vector<8x768xf32>
    %c766_i32_18 = arith.constant 766 : i32
    %57 = tpu.dynamic_rotate %54 by %c766_i32_18 dim 1 : vector<8x768xf32>, i32 -> vector<8x768xf32>
    %c750_i32_19 = arith.constant 750 : i32
    %58 = tpu.dynamic_rotate %54 by %c750_i32_19 dim 1 : vector<8x768xf32>, i32 -> vector<8x768xf32>
    %c749_i32_20 = arith.constant 749 : i32
    %59 = tpu.dynamic_rotate %54 by %c749_i32_20 dim 1 : vector<8x768xf32>, i32 -> vector<8x768xf32>
    %c748_i32_21 = arith.constant 748 : i32
    %60 = tpu.dynamic_rotate %54 by %c748_i32_21 dim 1 : vector<8x768xf32>, i32 -> vector<8x768xf32>
    %c732_i32_22 = arith.constant 732 : i32
    %61 = tpu.dynamic_rotate %54 by %c732_i32_22 dim 1 : vector<8x768xf32>, i32 -> vector<8x768xf32>
    %c731_i32_23 = arith.constant 731 : i32
    %62 = tpu.dynamic_rotate %54 by %c731_i32_23 dim 1 : vector<8x768xf32>, i32 -> vector<8x768xf32>
    %c730_i32_24 = arith.constant 730 : i32
    %63 = tpu.dynamic_rotate %54 by %c730_i32_24 dim 1 : vector<8x768xf32>, i32 -> vector<8x768xf32>
    %64 = tpu.concatenate %54, %56, %57, %58, %59, %60, %61, %62, %63 in 0 : vector<8x768xf32>, vector<8x768xf32>, vector<8x768xf32>, vector<8x768xf32>, vector<8x768xf32>, vector<8x768xf32>, vector<8x768xf32>, vector<8x768xf32>, vector<8x768xf32> -> vector<72x768xf32>
    %cst_25 = arith.constant dense<0.000000e+00> : vector<8x768xf32>
    %65 = tpu.matmul %2, %64, %cst_25 {dimension_numbers = #tpu.dot_dimension_numbers<[1], [0], [0], [1], [0, 0, 1, 1], [], []>} : vector<8x72xf32>, vector<72x768xf32>, vector<8x768xf32> -> vector<8x768xf32>
    %66 = vector.broadcast %6 : vector<8x1xf32> to vector<8x768xf32>
    %67 = arith.addf %65, %66 : vector<8x768xf32>
    %cst_26 = arith.constant 0.000000e+00 : f32
    %68 = vector.shape_cast %14 : vector<1x768xi1> to vector<1x768xi1>
    %69 = vector.broadcast %68 : vector<1x768xi1> to vector<8x768xi1>
    %70 = vector.broadcast %cst_26 : f32 to vector<8x768xf32>
    %71 = arith.select %69, %67, %70 : vector<8x768xi1>, vector<8x768xf32>
    %cst_27 = arith.constant dense<0.000000e+00> : vector<8xf32>
    %72 = vector.multi_reduction <add>, %71, %cst_27 [1] : vector<8x768xf32> to vector<8xf32>
    %73 = vector.shape_cast %72 : vector<8xf32> to vector<8x1xf32>
    %cst_28 = arith.constant 0.00255102036 : f32
    %74 = vector.broadcast %cst_28 : f32 to vector<8x1xf32>
    %75 = arith.mulf %73, %74 : vector<8x1xf32>
    %76 = vector.broadcast %75 : vector<8x1xf32> to vector<8x768xf32>
    %77 = arith.subf %67, %76 : vector<8x768xf32>
    %78 = arith.mulf %77, %77 : vector<8x768xf32>
    %cst_29 = arith.constant 0.000000e+00 : f32
    %79 = vector.shape_cast %14 : vector<1x768xi1> to vector<1x768xi1>
    %80 = vector.broadcast %79 : vector<1x768xi1> to vector<8x768xi1>
    %81 = vector.broadcast %cst_29 : f32 to vector<8x768xf32>
    %82 = arith.select %80, %78, %81 : vector<8x768xi1>, vector<8x768xf32>
    %cst_30 = arith.constant dense<0.000000e+00> : vector<8xf32>
    %83 = vector.multi_reduction <add>, %82, %cst_30 [1] : vector<8x768xf32> to vector<8xf32>
    %84 = vector.shape_cast %83 : vector<8xf32> to vector<8x1xf32>
    %cst_31 = arith.constant 0.00255102036 : f32
    %85 = vector.broadcast %cst_31 : f32 to vector<8x1xf32>
    %86 = arith.mulf %84, %85 : vector<8x1xf32>
    %cst_32 = arith.constant 9.99999974E-6 : f32
    %87 = vector.broadcast %cst_32 : f32 to vector<8x1xf32>
    %88 = arith.addf %86, %87 : vector<8x1xf32>
    %89 = math.rsqrt %88 : vector<8x1xf32>
    %90 = arith.mulf %89, %7 : vector<8x1xf32>
    %91 = vector.broadcast %90 : vector<8x1xf32> to vector<8x768xf32>
    %92 = arith.mulf %77, %91 : vector<8x768xf32>
    %93 = vector.broadcast %8 : vector<8x1xf32> to vector<8x768xf32>
    %94 = arith.addf %92, %93 : vector<8x768xf32>
    %c0_33 = arith.constant 0 : index
    %c0_34 = arith.constant 0 : index
    %95 = vector.load %arg4[%c0_33, %c0_34] : memref<8x768xf32, #tpu.memory_space<vmem>>, vector<8x768xf32>
    tpu.vector_store %arg4[%c0_33, %c0_34], %94 {strides = array<i32>} : memref<8x768xf32, #tpu.memory_space<vmem>>, vector<8x768xf32>,
    return
  }
}

</mosaic_0001>

<bundles_post_ra>
// kernel: tpu_custom_call.1
= control target key start
LH: loop header
LB: loop body
LE: loop exit
PB: predicated region body
PF: predicated region fallthrough
CT: control target
= control target key end

     0   :  { %10 = vsyncpa [#allocation3], 0  ;;  %s2254_s0 = inlined_call_operand.hbm [shape: f32[8,768], index: 0, kind: input, shape index: {}]   ;;  %s2255_s1 = inlined_call_operand.hbm [shape: f32[8,150], index: 1, kind: input, shape index: {}]   ;;  %s2256_s2 = inlined_call_operand.hbm [shape: f32[2,768], index: 2, kind: input, shape index: {}]   ;;  %s2257_s3 = inlined_call_operand.hbm [shape: f32[8,768], index: 3, kind: output, shape index: {0}]   ;;  %s2258_s4 = inlined_call_operand.hbm [shape: f32[8,768], index: 4, kind: output, shape index: {1}]  }
   0x1   :  { %11 = vsyncpa [#allocation6], 0 }
   0x2   :  { %12 = vsyncpa [#allocation4], 0 }
   0x3   :  { %13 = vsyncpa [#allocation10], 0  ;;  %s1487_s15 = smov [#allocation5]   ;;  %s1488_s17 = smov [#allocation2]  }
   0x4   :  { %s30_s16 = sshll.u32 %s1487_s15, 4  ;;  %s20_s18 = sshll.u32 %s1488_s17, 4  ;;  %s31_s16 = int_to_ptr.vmem [resolvable:$true] %s30_s16  ;;  %s21_s18 = int_to_ptr.vmem [resolvable:$true] %s20_s18 }
   0x5   :  { %s1369_s21 = scalar_lea.hbm %s2255_s1, 256 }
   0x6   :  { %p1370_p0 = scmp.ne.s32.totalorder %s2255_s1, %s1369_s21  ;;  %p1373_p1 = scmp.lt.u32.totalorder %s1369_s21, %s2255_s1 }
   0x8   :  { %p1375_p2 = pnand %p1373_p1, %p1370_p0 }
   0xa   :  { %1378 = shalt.err (!%p1375_p2)
}
   0xb   :  { %s1379_s26 = scalar_lea.vmem %s31_s16, 256  ;;  %p1384_p4 = scmp.lt.s32.totalorder %s31_s16, %s31_s16 }
   0xc   :  { %p1380_p3 = scmp.ne.s32.totalorder %s31_s16, %s1379_s26  ;;  %p1385_p5 = scmp.lt.s32.totalorder %s1379_s26, %s1379_s26 }
   0xe   :  { %p1386_p6 = por %p1385_p5, %p1384_p4 }
  0x10   :  { %p1387_p7 = pnand %p1386_p6, %p1380_p3 }
  0x12   :  { %1390 = shalt.err (!%p1387_p7)
}
  0x13   :  { %33 = dma.hbm_to_vmem [thread:$0]  %s2255_s1, 256, %s31_s16, [#allocation6]  }
  0x14   :  { %s1391_s5 = scalar_lea.hbm %s2254_s0, 768 }
  0x15   :  { %p1392_p8 = scmp.ne.s32.totalorder %s2254_s0, %s1391_s5  ;;  %p1395_p9 = scmp.lt.u32.totalorder %s1391_s5, %s2254_s0 }
  0x17   :  { %p1397_p10 = pnand %p1395_p9, %p1392_p8 }
  0x19   :  { %1400 = shalt.err (!%p1397_p10)
}
  0x1a   :  { %s1401_s10 = scalar_lea.vmem %s21_s18, 768  ;;  %p1406_p12 = scmp.lt.s32.totalorder %s21_s18, %s21_s18 }
  0x1b   :  { %p1402_p11 = scmp.ne.s32.totalorder %s21_s18, %s1401_s10  ;;  %p1407_p13 = scmp.lt.s32.totalorder %s1401_s10, %s1401_s10 }
  0x1d   :  { %p1408_p0 = por %p1407_p13, %p1406_p12 }
  0x1f   :  { %p1409_p1 = pnand %p1408_p0, %p1402_p11 }
  0x21   :  { %1412 = shalt.err (!%p1409_p1)
}
  0x22   :  { %23 = dma.hbm_to_vmem [thread:$0]  %s2254_s0, 768, %s21_s18, [#allocation3]  }
  0x23   :  { %s1489_s12 = smov [#allocation7]   ;;  %s1413_s16 = scalar_lea.hbm %s2256_s2, 192 }
  0x24   :  { %s40_s13 = sshll.u32 %s1489_s12, 4  ;;  %p1414_p2 = scmp.ne.s32.totalorder %s2256_s2, %s1413_s16  ;;  %s41_s13 = int_to_ptr.vmem [resolvable:$true] %s40_s13 }
  0x25   :  { %p1417_p3 = scmp.lt.u32.totalorder %s1413_s16, %s2256_s2 }
  0x27   :  { %p1419_p4 = pnand %p1417_p3, %p1414_p2 }
  0x29   :  { %1422 = shalt.err (!%p1419_p4)
}
  0x2a   :  { %s1423_s22 = scalar_lea.vmem %s41_s13, 192  ;;  %p1428_p6 = scmp.lt.s32.totalorder %s41_s13, %s41_s13 }
  0x2b   :  { %p1424_p5 = scmp.ne.s32.totalorder %s41_s13, %s1423_s22  ;;  %p1429_p7 = scmp.lt.s32.totalorder %s1423_s22, %s1423_s22 }
  0x2d   :  { %p1430_p8 = por %p1429_p7, %p1428_p6 }
  0x2f   :  { %p1431_p9 = pnand %p1430_p8, %p1424_p5 }
  0x31   :  { %1434 = shalt.err (!%p1431_p9)
}
  0x32   :  { %43 = dma.hbm_to_vmem [thread:$0]  %s2256_s2, 192, %s41_s13, [#allocation6]  }
  0x33   :  { %1479 = dma.done.wait [#allocation3], 768  }
  0x34   :  { %1480 = vsyncadd [#allocation3], 4294966528 }
  0x35   :  { %1481 = dma.done.wait [#allocation6], 448  }
  0x36   :  { %1482 = vsyncadd [#allocation6], 4294966848  ;;  %v1570_v0 = vld [vmem:[#allocation2 + $0x8] sm:$0xff]  ;;  %v1572_v1 = vld [vmem:[#allocation2 + $0x10] sm:$0xff]  ;;  %s1490_s23 = smov 126   ;;  %s1491_s24 = smov 127   ;;  %v78_v13 = vlaneseq }
  0x37   :  { %v1574_v2 = vld [vmem:[#allocation2] sm:$0xff]  ;;  %v1177_v3 = vpack.i.bf16 %v1572_v1, %v1570_v0  ;;  %v1578_v4 = vld [vmem:[#allocation2 + $0x18] sm:$0xff]  ;;  %s1492_s2 = smov 110   ;;  %s1493_s25 = smov 108   ;;  %v1596_v7 = vld [vmem:[#allocation2 + $0x28] sm:$0xff]  ;;  %v1497_v9 = vmov 0.0  }
  0x38   :  { %v1172_v5 = vpack.i.bf16 %v1578_v4, %v1574_v2  ;;  %s1494_s26 = smov 109   ;;  %s1495_s27 = smov 91   ;;  %v1594_v6 = vld [vmem:[#allocation2 + $0x20] sm:$0xff]  ;;  %293 = vmatprep.mubr.f32.mxu0 %v1497_v9  ;;  %364 = vmatprep.mubr.f32.mxu1 %v1497_v9  ;;  %v1499_v11 = vmov 16   ;;  %v1629_v12 = vld [vmem:[#allocation5 + $0x8] sm:$0xff]  ;;  %v1635_v14 = vand.u32 127, %v78_v13 }
  0x39   :  { %1178 = vrot.lane.b32.xlu1 %v1177_v3, %s1490_s23  ;;  %1168 = vrot.lane.b32.xlu0 %v1177_v3, %s1491_s24  ;;  %s1496_s28 = smov 92   ;;  %v1232_v8 = vpack.i.bf16 %v1596_v7, %v1594_v6  ;;  %s1498_s29 = smov 90   ;;  %v1257_v10 = vpack.i.bf16 %v1594_v6, %v1578_v4  ;;  %vm225_vm8 = vcmask 588800  }
  0x3a   :  { %1262 = vset.pattern.permute.xlu1 %v1499_v11  ;;  %vm80_vm0 = vcmp.lt.s32.totalorder %v1635_v14, 127  ;;  %vm99_vm1 = vcmp.lt.s32.totalorder %v1635_v14, 126  ;;  %vm118_vm2 = vcmp.lt.s32.totalorder %v1635_v14, 110  ;;  %vm137_vm3 = vcmp.lt.s32.totalorder %v1635_v14, 109  ;;  %s1503_s30 = smov 56   ;;  %s1507_s5 = smov [#allocation8]  }
  0x3b   :  { %vm156_vm4 = vcmp.lt.s32.totalorder %v1635_v14, 108  ;;  %vm194_vm5 = vcmp.lt.s32.totalorder %v1635_v14, 91  ;;  %vm175_vm6 = vcmp.lt.s32.totalorder %v1635_v14, 92  ;;  %vm213_vm7 = vcmp.lt.s32.totalorder %v1635_v14, 90  ;;  %s1019_s6 = sshll.u32 %s1507_s5, 4  ;;  %s1020_s6 = int_to_ptr.vmem [resolvable:$true] %s1019_s6 }
  0x3c   :  { %s1435_s7 = scalar_lea.vmem %s1020_s6, 768  ;;  %p1440_p11 = scmp.lt.s32.totalorder %s1020_s6, %s1020_s6 }
  0x3d   :  { %1183 = vrot.lane.b32.xlu1 %v1177_v3, %s1492_s2  ;;  %1173 = vrot.lane.b32.xlu0 %v1172_v5, %s1491_s24  ;;  %p1436_p10 = scmp.ne.s32.totalorder %s1020_s6, %s1435_s7  ;;  %p1441_p12 = scmp.lt.s32.totalorder %s1435_s7, %s1435_s7 }
  0x3f   :  { %p1442_p13 = por %p1441_p12, %p1440_p11 }
  0x41   :  { %1193 = vrot.lane.b32.xlu1 %v1172_v5, %s1492_s2  ;;  %1188 = vrot.lane.b32.xlu0 %v1172_v5, %s1490_s23  ;;  %p1443_p0 = pnand %p1442_p13, %p1436_p10 }
  0x45   :  { %1203 = vrot.lane.b32.xlu1 %v1177_v3, %s1493_s25  ;;  %1198 = vrot.lane.b32.xlu0 %v1177_v3, %s1494_s26 }
  0x49   :  { %1213 = vrot.lane.b32.xlu1 %v1172_v5, %s1493_s25  ;;  %1208 = vrot.lane.b32.xlu0 %v1172_v5, %s1494_s26 }
  0x4d   :  { %1223 = vrot.lane.b32.xlu1 %v1177_v3, %s1495_s27  ;;  %1218 = vrot.lane.b32.xlu0 %v1177_v3, %s1496_s28 }
  0x51   :  { %182 = vrot.lane.b32.xlu1 %v1574_v2, %s1495_s27  ;;  %163 = vrot.lane.b32.xlu0 %v1574_v2, %s1496_s28 }
  0x55   :  { %1233 = vrot.lane.b32.xlu1 %v1232_v8, %s1490_s23  ;;  %1228 = vrot.lane.b32.xlu0 %v1232_v8, %s1491_s24 }
  0x59   :  { %203 = vrot.lane.b32.xlu1 %v1570_v0, %s1498_s29  ;;  %1238 = vrot.lane.b32.xlu0 %v1232_v8, %s1492_s2 }
  0x5d   :  { %201 = vrot.lane.b32.xlu1 %v1574_v2, %s1498_s29  ;;  %205 = vrot.lane.b32.xlu0 %v1572_v1, %s1498_s29 }
  0x61   :  { %1248 = vrot.lane.b32.xlu1 %v1232_v8, %s1493_s25  ;;  %1243 = vrot.lane.b32.xlu0 %v1232_v8, %s1494_s26 }
  0x65   :  { %1258 = vrot.lane.b32.xlu1 %v1257_v10, %s1495_s27  ;;  %1253 = vrot.lane.b32.xlu0 %v1257_v10, %s1496_s28 }
  0x69   :  { %192 = vrot.lane.b32.xlu1 %v1596_v7, %s1495_s27  ;;  %173 = vrot.lane.b32.xlu0 %v1596_v7, %s1496_s28 }
  0x6d   :  { %209 = vrot.lane.b32.xlu1 %v1594_v6, %s1498_s29  ;;  %207 = vrot.lane.b32.xlu0 %v1578_v4, %s1498_s29 }
  0x71   :  { %211 = vrot.lane.b32.xlu0 %v1596_v7, %s1498_s29  ;;  %222 = vperm.xlu1 %1262, %v1629_v12  }
  0xab   :  { %v1637_v15 = vpop.permute.xlu1 %1178  ;;  %v1639_v16 = vpop.permute.xlu0 %1168 }
  0xac   :  { %v1171_v17 = vunpack.i.h.bf16 %v1639_v16  ;;  %v1170_v18 = vunpack.i.l.bf16 %v1639_v16  ;;  %v1181_v19 = vunpack.i.h.bf16 %v1637_v15  ;;  %v1180_v20 = vunpack.i.l.bf16 %v1637_v15 }
  0xae   :  { %v84_v21 = vsel %vm80_vm0, %v1170_v18, %v1171_v17  ;;  %v103_v29 = vsel %vm99_vm1, %v1180_v20, %v1181_v19 }
  0xaf   :  { %v1650_v22 = vpop.permute.xlu1 %1183  ;;  %v1652_v23 = vpop.permute.xlu0 %1173  ;;  %v1049_v24 = vpack.c.bf16 %v84_v21, %v1570_v0 }
  0xb0   :  { %v1186_v25 = vunpack.i.h.bf16 %v1650_v22  ;;  %v1185_v26 = vunpack.i.l.bf16 %v1650_v22  ;;  %v1175_v27 = vunpack.i.l.bf16 %v1652_v23  ;;  %v1176_v10 = vunpack.i.h.bf16 %v1652_v23 }
  0xb1   :  { %1050 = vmatprep.subr.bf16.mxu0 %v1049_v24 }
  0xb2   :  { %v85_v28 = vsel %vm80_vm0, %v1175_v27, %v1170_v18  ;;  %v122_v30 = vsel %vm118_vm2, %v1185_v26, %v1186_v25 }
  0xb3   :  { %v1672_v31 = vpop.permute.xlu1 %1193  ;;  %v1674_v32 = vpop.permute.xlu0 %1188  ;;  %v1051_v33 = vpack.c.bf16 %v85_v28, %v1574_v2  ;;  %v1053_v34 = vpack.c.bf16 %v122_v30, %v103_v29  ;;  %v83_v28 = vsel %vm80_vm0, %v1171_v17, %v1176_v10 }
  0xb4   :  { %v1195_v35 = vunpack.i.l.bf16 %v1672_v31  ;;  %v1190_v36 = vunpack.i.l.bf16 %v1674_v32  ;;  %v1196_v24 = vunpack.i.h.bf16 %v1672_v31 }
  0xb5   :  { %1052 = vmatpush1.bf16.msra.mxu0 %v1051_v33 }
  0xb6   :  { %1054 = vmatprep.subr.bf16.mxu0 %v1053_v34  ;;  %v104_v37 = vsel %vm99_vm1, %v1190_v36, %v1180_v20  ;;  %v123_v38 = vsel %vm118_vm2, %v1195_v35, %v1185_v26  ;;  %v1191_v26 = vunpack.i.h.bf16 %v1674_v32  ;;  %v121_v17 = vsel %vm118_vm2, %v1186_v25, %v1196_v24 }
  0xb7   :  { %v1687_v39 = vpop.permute.xlu1 %1203  ;;  %v1689_v40 = vpop.permute.xlu0 %1198  ;;  %v1055_v41 = vpack.c.bf16 %v123_v38, %v104_v37 }
  0xb8   :  { %v1206_v42 = vunpack.i.h.bf16 %v1687_v39  ;;  %v1205_v43 = vunpack.i.l.bf16 %v1687_v39  ;;  %v1201_v44 = vunpack.i.h.bf16 %v1689_v40  ;;  %v1200_v45 = vunpack.i.l.bf16 %v1689_v40 }
  0xb9   :  { %1056 = vmatpush1.bf16.msra.mxu0 %v1055_v41  ;;  %v102_v16 = vsel %vm99_vm1, %v1181_v19, %v1191_v26 }
  0xba   :  { %v141_v46 = vsel %vm137_vm3, %v1200_v45, %v1201_v44  ;;  %v160_v47 = vsel %vm156_vm4, %v1205_v43, %v1206_v42 }
  0xbb   :  { %v1705_v48 = vpop.permute.xlu1 %1213  ;;  %v1707_v49 = vpop.permute.xlu0 %1208  ;;  %v1057_v50 = vpack.c.bf16 %v160_v47, %v141_v46 }
  0xbc   :  { %v1215_v51 = vunpack.i.l.bf16 %v1705_v48  ;;  %v1210_v52 = vunpack.i.l.bf16 %v1707_v49  ;;  %v1211_v46 = vunpack.i.h.bf16 %v1707_v49  ;;  %v1216_v19 = vunpack.i.h.bf16 %v1705_v48 }
  0xbd   :  { %1058 = vmatprep.subr.bf16.mxu0 %v1057_v50 }
  0xbe   :  { %v142_v53 = vsel %vm137_vm3, %v1210_v52, %v1200_v45  ;;  %v161_v54 = vsel %vm156_vm4, %v1215_v51, %v1205_v43  ;;  %v1067_v45 = vpack.c.bf16 %v83_v28, %v1572_v1 }
  0xbf   :  { %v1719_v55 = vpop.permute.xlu1 %1223  ;;  %v1721_v56 = vpop.permute.xlu0 %1218  ;;  %v1059_v57 = vpack.c.bf16 %v161_v54, %v142_v53 }
  0xc0   :  { %v1226_v58 = vunpack.i.h.bf16 %v1719_v55  ;;  %v1225_v59 = vunpack.i.l.bf16 %v1719_v55  ;;  %v1221_v60 = vunpack.i.h.bf16 %v1721_v56  ;;  %v1220_v61 = vunpack.i.l.bf16 %v1721_v56 }
  0xc1   :  { %1060 = vmatpush1.bf16.msra.mxu0 %v1059_v57  ;;  %v1789_v57 = vld [vmem:[#allocation5] sm:$0xff] }
  0xc2   :  { %v179_v62 = vsel %vm175_vm6, %v1220_v61, %v1221_v60  ;;  %v198_v63 = vsel %vm194_vm5, %v1225_v59, %v1226_v58 }
  0xc3   :  { %v1737_v0 = vpop.permute.xlu1 %182  ;;  %v1739_v2 = vpop.permute.xlu0 %163  ;;  %v1061_v3 = vpack.c.bf16 %v198_v63, %v179_v62  ;;  %v140_v62 = vsel %vm137_vm3, %v1201_v44, %v1211_v46  ;;  %v159_v44 = vsel %vm156_vm4, %v1206_v42, %v1216_v19 }
  0xc4   :  { %v199_v5 = vsel %vm194_vm5, %v1737_v0, %v1225_v59  ;;  %v180_v8 = vsel %vm175_vm6, %v1739_v2, %v1220_v61 }
  0xc5   :  { %v1063_v11 = vpack.c.bf16 %v199_v5, %v180_v8  ;;  %1062 = vmatprep.subr.bf16.mxu0 %v1061_v3 }
  0xc7   :  { %v1234_v18 = vpop.permute.xlu1 %1233  ;;  %v1229_v20 = vpop.permute.xlu0 %1228  ;;  %1064 = vmatpush1.bf16.msra.mxu0 %v1063_v11 }
  0xc8   :  { %v1230_v21 = vunpack.i.l.bf16 %v1229_v20  ;;  %v1235_v29 = vunpack.i.l.bf16 %v1234_v18  ;;  %v1231_v30 = vunpack.i.h.bf16 %v1229_v20 }
  0xca   :  { %v82_v33 = vsel %vm80_vm0, %v1176_v10, %v1230_v21  ;;  %v101_v1 = vsel %vm99_vm1, %v1191_v26, %v1235_v29  ;;  %v86_v15 = vsel %vm80_vm0, %v1231_v30, %v1175_v27  ;;  %v81_v22 = vsel %vm80_vm0, %v1230_v21, %v1231_v30 }
  0xcb   :  { %v204_v34 = vpop.permute.xlu1 %203  ;;  %v1239_v37 = vpop.permute.xlu0 %1238  ;;  %v1065_v38 = vpack.c.bf16 %v82_v33, %v1578_v4  ;;  %v1236_v4 = vunpack.i.h.bf16 %v1234_v18  ;;  %v1071_v27 = vpack.c.bf16 %v121_v17, %v102_v16  ;;  %v1081_v61 = vpack.c.bf16 %v86_v15, %v1596_v7 }
  0xcc   :  { %v1241_v41 = vunpack.i.h.bf16 %v1239_v37  ;;  %v1240_v43 = vunpack.i.l.bf16 %v1239_v37  ;;  %v1083_v63 = vpack.c.bf16 %v81_v22, %v1594_v6 }
  0xcd   :  { %1066 = vmatprep.subr.bf16.mxu1 %v1065_v38  ;;  %v105_v31 = vsel %vm99_vm1, %v1236_v4, %v1190_v36  ;;  %v100_v7 = vsel %vm99_vm1, %v1235_v29, %v1236_v4  ;;  %v1075_v29 = vpack.c.bf16 %v159_v44, %v140_v62 }
  0xce   :  { %1068 = vmatpush1.bf16.msra.mxu1 %v1067_v45  ;;  %v120_v47 = vsel %vm118_vm2, %v1196_v24, %v1240_v43  ;;  %v124_v59 = vsel %vm118_vm2, %v1241_v41, %v1195_v35  ;;  %v119_v3 = vsel %vm118_vm2, %v1240_v43, %v1241_v41 }
  0xcf   :  { %v1779_v50 = vpop.permute.xlu1 %201  ;;  %v1781_v25 = vpop.permute.xlu0 %205  ;;  %v1069_v53 = vpack.c.bf16 %v120_v47, %v101_v1  ;;  %v1085_v6 = vpack.c.bf16 %v124_v59, %v105_v31  ;;  %v1087_v36 = vpack.c.bf16 %v119_v3, %v100_v7  ;;  %v1500_v59 = vmov 0  }
  0xd0   :  { %v217_v54 = vsel %vm213_vm7, %v204_v34, %v1781_v25  ;;  %v218_v23 = vsel %vm213_vm7, %v1779_v50, %v204_v34 }
  0xd1   :  { %245 = vmatprep.subr.mxu0 %v217_v54  ;;  %1070 = vmatprep.subr.bf16.mxu1 %v1069_v53  ;;  %v1871_v54 = vshrl.u32 %v78_v13, 7 }
  0xd2   :  { %246 = vmatpush1.msra.mxu0 %v218_v23  ;;  %1072 = vmatpush1.bf16.msra.mxu1 %v1071_v27 }
  0xd3   :  { %v1249_v35 = vpop.permute.xlu1 %1248  ;;  %v1244_v40 = vpop.permute.xlu0 %1243  ;;  %1082 = vmatprep.subr.bf16.mxu0 %v1081_v61  ;;  %1043 = vmatmul.mubr.msk.f32.vlgmr.msra.gmra.mrb[0].mxu0 %vm225_vm8, %v1789_v57  ;;  %v445_v27 = vsub.s32 0, %v1871_v54  ;;  %v453_v31 = vsub.s32 2, %v1871_v54  ;;  %v457_v13 = vsub.s32 3, %v1871_v54 }
  0xd4   :  { %v1251_v5 = vunpack.i.h.bf16 %v1249_v35  ;;  %v1250_v32 = vunpack.i.l.bf16 %v1249_v35  ;;  %v1246_v8 = vunpack.i.h.bf16 %v1244_v40  ;;  %v1245_v10 = vunpack.i.l.bf16 %v1244_v40  ;;  %1084 = vmatpush1.bf16.msra.mxu0 %v1083_v63  ;;  %435 = vmatprep.mubr.f32.mxu0 %v1497_v9 }
  0xd5   :  { %1086 = vmatprep.subr.bf16.mxu0 %v1085_v6  ;;  %v461_v6 = vsub.s32 4, %v1871_v54 }
  0xd6   :  { %v157_v11 = vsel %vm156_vm4, %v1250_v32, %v1251_v5  ;;  %v138_v18 = vsel %vm137_vm3, %v1245_v10, %v1246_v8  ;;  %v139_v39 = vsel %vm137_vm3, %v1211_v46, %v1245_v10  ;;  %v158_v42 = vsel %vm156_vm4, %v1216_v19, %v1250_v32 }
  0xd7   :  { %v1259_v20 = vpop.permute.xlu1 %1258  ;;  %v1254_v21 = vpop.permute.xlu0 %1253  ;;  %v1073_v24 = vpack.c.bf16 %v158_v42, %v139_v39  ;;  %v143_v26 = vsel %vm137_vm3, %v1246_v8, %v1210_v52  ;;  %v162_v28 = vsel %vm156_vm4, %v1251_v5, %v1215_v51  ;;  %v1091_v38 = vpack.c.bf16 %v157_v11, %v138_v18 }
  0xd8   :  { %v1261_v30 = vunpack.i.h.bf16 %v1259_v20  ;;  %v1260_v33 = vunpack.i.l.bf16 %v1259_v20  ;;  %v1256_v34 = vunpack.i.h.bf16 %v1254_v21  ;;  %v1255_v37 = vunpack.i.l.bf16 %v1254_v21  ;;  %1088 = vmatpush1.bf16.msra.mxu0 %v1087_v36 }
  0xd9   :  { %1074 = vmatprep.subr.bf16.mxu1 %v1073_v24  ;;  %v1089_v41 = vpack.c.bf16 %v162_v28, %v143_v26  ;;  %v465_v5 = vsub.s32 5, %v1871_v54 }
  0xda   :  { %1076 = vmatpush1.bf16.msra.mxu1 %v1075_v29  ;;  %v177_v49 = vsel %vm175_vm6, %v1255_v37, %v1256_v34  ;;  %v196_v52 = vsel %vm194_vm5, %v1260_v33, %v1261_v30  ;;  %v178_v48 = vsel %vm175_vm6, %v1221_v60, %v1255_v37  ;;  %v197_v51 = vsel %vm194_vm5, %v1226_v58, %v1260_v33 }
  0xdb   :  { %1090 = vmatprep.subr.bf16.mxu0 %v1089_v41  ;;  %v193_v43 = vpop.permute.xlu1 %192  ;;  %v174_v45 = vpop.permute.xlu0 %173  ;;  %v1077_v46 = vpack.c.bf16 %v196_v52, %v177_v49  ;;  %v1079_v16 = vpack.c.bf16 %v197_v51, %v178_v48 }
  0xdc   :  { %v195_v17 = vsel %vm194_vm5, %v1261_v30, %v193_v43  ;;  %v200_v56 = vsel %vm194_vm5, %v193_v43, %v1737_v0  ;;  %v176_v60 = vsel %vm175_vm6, %v1256_v34, %v174_v45  ;;  %v181_v55 = vsel %vm175_vm6, %v174_v45, %v1739_v2  ;;  %1092 = vmatpush1.bf16.msra.mxu0 %v1091_v38 }
  0xdd   :  { %v1093_v58 = vpack.c.bf16 %v200_v56, %v181_v55  ;;  %v1095_v4 = vpack.c.bf16 %v195_v17, %v176_v60  ;;  %1078 = vmatprep.subr.bf16.mxu1 %v1077_v46 }
  0xde   :  { %1080 = vmatpush1.bf16.msra.mxu1 %v1079_v16 }
  0xdf   :  { %v210_v1 = vpop.permute.xlu1 %209  ;;  %v208_v47 = vpop.permute.xlu0 %207  ;;  %1094 = vmatprep.subr.bf16.mxu0 %v1093_v58 }
  0xe0   :  { %1096 = vmatpush1.bf16.msra.mxu0 %v1095_v4  ;;  %v215_v15 = vsel %vm213_vm7, %v208_v47, %v210_v1  ;;  %v216_v0 = vsel %vm213_vm7, %v1781_v25, %v208_v47  ;;  %v55_v25 = vld [vmem:[#allocation7] ss:$2 sm:$0x3f] }
  0xe1   :  { %316 = vmatprep.subr.mxu1 %v215_v15  ;;  %vm56_vm9 = vcmp.ne.f32.partialorder %v55_v25, 0.0 }
  0xe2   :  { %317 = vmatpush1.msra.mxu1 %v216_v0  ;;  %v442_v61 = vsel %vm56_vm9, 1, %v1500_v59  ;;  %vm695_vm9 = vcmask 457728  }
  0xe3   :  { %v212_v19 = vpop.permute.xlu0 %211  ;;  %1044 = vmatmul.mubr.msk.f32.vlgmr.msra.gmra.mrb[0].mxu1 %vm225_vm8, %v1789_v57  ;;  %v446_v63 = vrot.slane %v442_v61, %v445_v27  ;;  %v454_v40 = vrot.slane %v442_v61, %v453_v31  ;;  %v458_v44 = vrot.slane %v442_v61, %v457_v13  ;;  %v462_v36 = vrot.slane %v442_v61, %v461_v6 }
  0xe4   :  { %v214_v2 = vsel %vm213_vm7, %v210_v1, %v212_v19  ;;  %v219_v22 = vsel %vm213_vm7, %v212_v19, %v1779_v50  ;;  %763 = vmatprep.mubr.f32.mxu1 %v1497_v9  ;;  %v449_v50 = vsub.s32 1, %v1871_v54  ;;  %v466_v39 = vrot.slane %v442_v61, %v465_v5 }
  0xe5   :  { %387 = vmatprep.subr.mxu0 %v219_v22  ;;  %vm467_vm10 = vcmp.eq.s32.totalorder %v446_v63, 1  ;;  %vm469_vm12 = vcmp.eq.s32.totalorder %v454_v40, 1  ;;  %vm470_vm13 = vcmp.eq.s32.totalorder %v458_v44, 1  ;;  %vm471_vm14 = vcmp.eq.s32.totalorder %v462_v36, 1 }
  0xe6   :  { %388 = vmatpush1.msra.mxu0 %v214_v2  ;;  %v450_v3 = vrot.slane %v442_v61, %v449_v50  ;;  %vm472_vm15 = vcmp.eq.s32.totalorder %v466_v39, 1  ;;  %v1501_v63 = vmov 17  }
  0xe7   :  { %1045 = vmatmul.mubr.msk.f32.vlgmr.msra.gmra.mrb[2].mxu0 %vm225_vm8, %v1789_v57  ;;  %1263 = vset.pattern.permute.xlu0 %v1501_v63 }
  0xe8   :  { %834 = vmatprep.mubr.f32.mxu0 %v1497_v9  ;;  %vm468_vm11 = vcmp.eq.s32.totalorder %v450_v3, 1  ;;  %v1502_v3 = vmov 18  }
  0xe9   :  { %1264 = vset.pattern.permute.xlu1 %v1502_v3 }
  0xf0   :  { %v223_v62 = vpop.permute.xlu1 %222 }
 0x1a6   :  { %v295_v53 = vpop.f32.mrb[0].mxu0 }
 0x1a7   :  { %v297_v23 = vpop.f32.mrb[1].mxu0  ;;  %v296_v7 = vadd.f32 %v295_v53, %v223_v62 }
 0x1a8   :  { %v298_v35 = vadd.f32 %v297_v23, %v223_v62 }
 0x1a9   :  { %v473_v32 = vsel %vm467_vm10, %v296_v7, 0.0 }
 0x1aa   :  { %v474_v8 = vsel %vm468_vm11, %v298_v35, 0.0 }
 0x1ab   :  { %v479_v42 = vadd.f32 %v474_v8, %v473_v32 }
 0x1b6   :  { %v366_v10 = vpop.f32.mrb[0].mxu1 }
 0x1b7   :  { %v367_v11 = vadd.f32 %v366_v10, %v223_v62  ;;  %v368_v18 = vpop.f32.mrb[1].mxu1 }
 0x1b8   :  { %v369_v20 = vadd.f32 %v368_v18, %v223_v62 }
 0x1b9   :  { %v475_v21 = vsel %vm469_vm12, %v367_v11, 0.0 }
 0x1ba   :  { %v480_v24 = vadd.f32 %v479_v42, %v475_v21  ;;  %v476_v26 = vsel %vm470_vm13, %v369_v20, 0.0  ;;  %v437_v28 = vpop.f32.mrb[2].mxu0 }
 0x1bb   :  { %v438_v29 = vadd.f32 %v437_v28, %v223_v62  ;;  %v439_v30 = vpop.f32.mrb[3].mxu0 }
 0x1bc   :  { %v481_v33 = vadd.f32 %v480_v24, %v476_v26  ;;  %v440_v34 = vadd.f32 %v439_v30, %v223_v62 }
 0x1bd   :  { %v477_v37 = vsel %vm471_vm14, %v438_v29, 0.0 }
 0x1be   :  { %v478_v38 = vsel %vm472_vm15, %v440_v34, 0.0  ;;  %v482_v41 = vadd.f32 %v481_v33, %v477_v37 }
 0x1c0   :  { %v483_v49 = vadd.f32 %v482_v41, %v478_v38  ;;  %v1504_v38 = vmov 19  }
 0x1c2   :  { %484 = vadd.xlane.f32.xlu0 %v483_v49 }
 0x24f   :  { %v485_v52 = vpop.xlane.xlu0 %484 }
 0x250   :  { %v486_v48 = vmul.f32 0.001953125, %v485_v52 }
 0x252   :  { %v487_v51 = vsub.f32 %v296_v7, %v486_v48  ;;  %v488_v43 = vsub.f32 %v298_v35, %v486_v48  ;;  %v489_v45 = vsub.f32 %v367_v11, %v486_v48  ;;  %v490_v46 = vsub.f32 %v369_v20, %v486_v48 }
 0x253   :  { %v491_v16 = vsub.f32 %v438_v29, %v486_v48  ;;  %v492_v55 = vsub.f32 %v440_v34, %v486_v48 }
 0x254   :  { %v493_v17 = vmul.f32 %v487_v51, %v487_v51  ;;  %v494_v56 = vmul.f32 %v488_v43, %v488_v43  ;;  %v495_v60 = vmul.f32 %v489_v45, %v489_v45  ;;  %v496_v58 = vmul.f32 %v490_v46, %v490_v46 }
 0x255   :  { %v497_v15 = vmul.f32 %v491_v16, %v491_v16  ;;  %v498_v2 = vmul.f32 %v492_v55, %v492_v55 }
 0x256   :  { %v499_v4 = vsel %vm467_vm10, %v493_v17, 0.0  ;;  %v500_v1 = vsel %vm468_vm11, %v494_v56, 0.0  ;;  %v501_v0 = vsel %vm469_vm12, %v495_v60, 0.0  ;;  %v502_v22 = vsel %vm470_vm13, %v496_v58, 0.0 }
 0x257   :  { %v505_v47 = vadd.f32 %v500_v1, %v499_v4  ;;  %v503_v53 = vsel %vm471_vm14, %v497_v15, 0.0  ;;  %v504_v61 = vsel %vm472_vm15, %v498_v2, 0.0 }
 0x259   :  { %v506_v19 = vadd.f32 %v505_v47, %v501_v0 }
 0x25b   :  { %v507_v25 = vadd.f32 %v506_v19, %v502_v22 }
 0x25d   :  { %v508_v23 = vadd.f32 %v507_v25, %v503_v53 }
 0x25f   :  { %v509_v62 = vadd.f32 %v508_v23, %v504_v61 }
 0x261   :  { %510 = vadd.xlane.f32.xlu1 %v509_v62 }
 0x272   :  { %528 = vperm.xlu1 %1264, %v1629_v12  }
 0x276   :  { %693 = vrot.lane.b32.xlu1 %v1629_v12, %s1503_s30 }
 0x277   :  { %1360 = vset.pattern.permute.xlu1 %v1504_v38 }
 0x2ee   :  { %v511_v7 = vpop.xlane.xlu1 %510 }
 0x2ef   :  { %v512_v35 = vmul.f32 0.001953125, %v511_v7 }
 0x2f1   :  { %v513_v40 = vadd.f32 1e-05, %v512_v35 }
 0x2f2   :  { %v529_v10 = vpop.permute.xlu1 %528 }
 0x2f3   :  { %1364 = vrsqrt.f32 %v513_v40 }
 0x2f6   :  { %v1971_v49 = vpop.permute.xlu1 %693 }
 0x2fd   :  { %v1365_v44 = vpop.eup %1364 }
 0x2fe   :  { %v515_v32 = vmul.f32 %v1365_v44, %v1629_v12 }
 0x300   :  { %518 = vperm.xlu0 %1263, %v515_v32  }
 0x304   :  { %691 = vrot.lane.b32.xlu0 %v1789_v57, %s1503_s30 }
 0x37f   :  { %v519_v8 = vpop.permute.xlu0 %518 }
 0x380   :  { %v521_v36 = vmul.f32 %v519_v8, %v487_v51  ;;  %v522_v11 = vmul.f32 %v519_v8, %v488_v43  ;;  %v523_v18 = vmul.f32 %v519_v8, %v489_v45  ;;  %v524_v39 = vmul.f32 %v519_v8, %v490_v46 }
 0x381   :  { %v525_v42 = vmul.f32 %v519_v8, %v491_v16  ;;  %v526_v20 = vmul.f32 %v519_v8, %v492_v55 }
 0x382   :  { %v1908_v21 = vadd.f32 %v529_v10, %v521_v36  ;;  %v532_v24 = vadd.f32 %v529_v10, %v522_v11  ;;  %v1910_v26 = vadd.f32 %v529_v10, %v523_v18  ;;  %v1912_v28 = vadd.f32 %v529_v10, %v524_v39 }
 0x383   :  { %v1914_v29 = vadd.f32 %v529_v10, %v525_v42  ;;  %v1916_v30 = vadd.f32 %v529_v10, %v526_v20  ;;  %v1969_v41 = vpop.permute.xlu0 %691 }
 0x384   :  { %537 = vst [vmem:[#allocation8] sm:$0xff] %v1908_v21  ;;  %538 = vst [vmem:[#allocation8 + $0x8] sm:$0xff] %v532_v24  ;;  %v1295_v57 = vpack.i.bf16 %v1910_v26, %v532_v24  ;;  %v1305_v33 = vpack.i.bf16 %v1912_v28, %v1908_v21 }
 0x385   :  { %539 = vst [vmem:[#allocation8 + $0x10] sm:$0xff] %v1910_v26  ;;  %540 = vst [vmem:[#allocation8 + $0x18] sm:$0xff] %v1912_v28  ;;  %v1325_v34 = vpack.i.bf16 %v1916_v30, %v1914_v29  ;;  %v1350_v37 = vpack.i.bf16 %v1914_v29, %v1912_v28 }
 0x386   :  { %541 = vst [vmem:[#allocation8 + $0x20] sm:$0xff] %v1914_v29  ;;  %542 = vst [vmem:[#allocation8 + $0x28] sm:$0xff] %v1916_v30  ;;  %1296 = vrot.lane.b32.xlu0 %v1295_v57, %s1494_s26  ;;  %1266 = vrot.lane.b32.xlu1 %v1295_v57, %s1491_s24 }
 0x38a   :  { %1306 = vrot.lane.b32.xlu0 %v1305_v33, %s1494_s26  ;;  %1271 = vrot.lane.b32.xlu1 %v1305_v33, %s1491_s24 }
 0x38e   :  { %1316 = vrot.lane.b32.xlu0 %v1295_v57, %s1496_s28  ;;  %1276 = vrot.lane.b32.xlu1 %v1295_v57, %s1490_s23 }
 0x392   :  { %633 = vrot.lane.b32.xlu0 %v1908_v21, %s1496_s28  ;;  %1281 = vrot.lane.b32.xlu1 %v1295_v57, %s1492_s2 }
 0x396   :  { %1326 = vrot.lane.b32.xlu0 %v1325_v34, %s1491_s24  ;;  %1286 = vrot.lane.b32.xlu1 %v1305_v33, %s1490_s23 }
 0x39a   :  { %1336 = vrot.lane.b32.xlu0 %v1325_v34, %s1492_s2  ;;  %1291 = vrot.lane.b32.xlu1 %v1305_v33, %s1492_s2 }
 0x39e   :  { %673 = vrot.lane.b32.xlu0 %v1910_v26, %s1498_s29  ;;  %1301 = vrot.lane.b32.xlu1 %v1295_v57, %s1493_s25 }
 0x3a2   :  { %1341 = vrot.lane.b32.xlu0 %v1325_v34, %s1494_s26  ;;  %1311 = vrot.lane.b32.xlu1 %v1305_v33, %s1493_s25 }
 0x3a6   :  { %1351 = vrot.lane.b32.xlu0 %v1350_v37, %s1496_s28  ;;  %1321 = vrot.lane.b32.xlu1 %v1295_v57, %s1495_s27 }
 0x3aa   :  { %643 = vrot.lane.b32.xlu0 %v1916_v30, %s1496_s28  ;;  %651 = vrot.lane.b32.xlu1 %v1908_v21, %s1495_s27 }
 0x3ae   :  { %675 = vrot.lane.b32.xlu0 %v1912_v28, %s1498_s29  ;;  %1331 = vrot.lane.b32.xlu1 %v1325_v34, %s1490_s23 }
 0x3b2   :  { %679 = vrot.lane.b32.xlu0 %v1916_v30, %s1498_s29  ;;  %671 = vrot.lane.b32.xlu1 %v532_v24, %s1498_s29 }
 0x3b6   :  { %669 = vrot.lane.b32.xlu1 %v1908_v21, %s1498_s29 }
 0x3ba   :  { %1346 = vrot.lane.b32.xlu1 %v1325_v34, %s1493_s25 }
 0x3be   :  { %1356 = vrot.lane.b32.xlu1 %v1350_v37, %s1495_s27 }
 0x3c2   :  { %661 = vrot.lane.b32.xlu1 %v1916_v30, %s1495_s27 }
 0x3c6   :  { %677 = vrot.lane.b32.xlu1 %v1914_v29, %s1498_s29 }
 0x3ca   :  { %688 = vperm.xlu1 %1360, %v1629_v12  }
 0x3f8   :  { %v1973_v52 = vpop.permute.xlu0 %1296  ;;  %v1267_v48 = vpop.permute.xlu1 %1266 }
 0x3f9   :  { %v1269_v51 = vunpack.i.h.bf16 %v1267_v48  ;;  %v1268_v43 = vunpack.i.l.bf16 %v1267_v48  ;;  %v1299_v8 = vunpack.i.h.bf16 %v1973_v52  ;;  %v1298_v10 = vunpack.i.l.bf16 %v1973_v52 }
 0x3fb   :  { %v558_v45 = vsel %vm80_vm0, %v1268_v43, %v1269_v51 }
 0x3fc   :  { %v1977_v46 = vpop.permute.xlu0 %1306  ;;  %v1979_v16 = vpop.permute.xlu1 %1271  ;;  %v1097_v17 = vpack.c.bf16 %v558_v45, %v532_v24  ;;  %v612_v24 = vsel %vm137_vm3, %v1298_v10, %v1299_v8 }
 0x3fd   :  { %v1273_v56 = vunpack.i.l.bf16 %v1979_v16  ;;  %v1274_v2 = vunpack.i.h.bf16 %v1979_v16 }
 0x3fe   :  { %1098 = vmatprep.subr.bf16.mxu1 %v1097_v17 }
 0x3ff   :  { %v559_v12 = vsel %vm80_vm0, %v1273_v56, %v1268_v43  ;;  %v557_v63 = vsel %vm80_vm0, %v1269_v51, %v1274_v2 }
 0x400   :  { %v1099_v60 = vpack.c.bf16 %v559_v12, %v1908_v21  ;;  %v1987_v55 = vpop.permute.xlu0 %1316  ;;  %v1989_v58 = vpop.permute.xlu1 %1276  ;;  %v1115_v44 = vpack.c.bf16 %v557_v63, %v1910_v26  ;;  %v1308_v21 = vunpack.i.l.bf16 %v1977_v46 }
 0x401   :  { %v1279_v4 = vunpack.i.h.bf16 %v1989_v58  ;;  %v1278_v1 = vunpack.i.l.bf16 %v1989_v58  ;;  %v1319_v38 = vunpack.i.h.bf16 %v1987_v55  ;;  %v1318_v48 = vunpack.i.l.bf16 %v1987_v55 }
 0x402   :  { %1100 = vmatpush1.bf16.msra.mxu1 %v1099_v60  ;;  %v613_v37 = vsel %vm137_vm3, %v1308_v21, %v1298_v10 }
 0x403   :  { %v576_v22 = vsel %vm99_vm1, %v1278_v1, %v1279_v4 }
 0x404   :  { %v1993_v47 = vpop.permute.xlu0 %633  ;;  %v1995_v15 = vpop.permute.xlu1 %1281 }
 0x405   :  { %v1284_v0 = vunpack.i.h.bf16 %v1995_v15  ;;  %v1283_v19 = vunpack.i.l.bf16 %v1995_v15 }
 0x407   :  { %v594_v25 = vsel %vm118_vm2, %v1283_v19, %v1284_v0 }
 0x408   :  { %v2008_v53 = vpop.permute.xlu0 %1326  ;;  %v2010_v23 = vpop.permute.xlu1 %1286  ;;  %v1101_v61 = vpack.c.bf16 %v594_v25, %v576_v22  ;;  %v649_v25 = vsel %vm175_vm6, %v1993_v47, %v1318_v48 }
 0x409   :  { %v1328_v62 = vunpack.i.l.bf16 %v2008_v53  ;;  %v1288_v3 = vunpack.i.l.bf16 %v2010_v23 }
 0x40a   :  { %1102 = vmatprep.subr.bf16.mxu1 %v1101_v61 }
 0x40b   :  { %v556_v7 = vsel %vm80_vm0, %v1274_v2, %v1328_v62  ;;  %v577_v36 = vsel %vm99_vm1, %v1288_v3, %v1278_v1  ;;  %v648_v1 = vsel %vm175_vm6, %v1318_v48, %v1319_v38 }
 0x40c   :  { %v2020_v35 = vpop.permute.xlu1 %1291  ;;  %v1113_v40 = vpack.c.bf16 %v556_v7, %v1912_v28  ;;  %v2048_v28 = vpop.permute.xlu0 %1336 }
 0x40d   :  { %v1293_v32 = vunpack.i.l.bf16 %v2020_v35  ;;  %v1294_v63 = vunpack.i.h.bf16 %v2020_v35 }
 0x40e   :  { %1114 = vmatprep.subr.bf16.mxu0 %v1113_v40  ;;  %v1338_v40 = vunpack.i.l.bf16 %v2048_v28 }
 0x40f   :  { %v595_v11 = vsel %vm118_vm2, %v1293_v32, %v1283_v19  ;;  %1116 = vmatpush1.bf16.msra.mxu0 %v1115_v44  ;;  %v1289_v44 = vunpack.i.h.bf16 %v2010_v23 }
 0x410   :  { %v1103_v18 = vpack.c.bf16 %v595_v11, %v577_v36  ;;  %v2035_v39 = vpop.permute.xlu1 %1301  ;;  %v2067_v60 = vpop.permute.xlu0 %673 }
 0x411   :  { %v1304_v42 = vunpack.i.h.bf16 %v2035_v39  ;;  %v1303_v20 = vunpack.i.l.bf16 %v2035_v39 }
 0x412   :  { %1104 = vmatpush1.bf16.msra.mxu1 %v1103_v18  ;;  %v1329_v18 = vunpack.i.h.bf16 %v2008_v53 }
 0x413   :  { %v630_v26 = vsel %vm156_vm4, %v1303_v20, %v1304_v42 }
 0x414   :  { %v2050_v57 = vpop.permute.xlu1 %1311  ;;  %v1105_v33 = vpack.c.bf16 %v630_v26, %v612_v24  ;;  %v1342_v10 = vpop.permute.xlu0 %1341  ;;  %v592_v26 = vsel %vm118_vm2, %v1294_v63, %v1338_v40  ;;  %v560_v58 = vsel %vm80_vm0, %v1329_v18, %v1273_v56 }
 0x415   :  { %v1313_v34 = vunpack.i.l.bf16 %v2050_v57  ;;  %v1314_v16 = vunpack.i.h.bf16 %v2050_v57  ;;  %v1129_v53 = vpack.c.bf16 %v560_v58, %v1916_v30  ;;  %v1309_v30 = vunpack.i.h.bf16 %v1977_v46 }
 0x416   :  { %1106 = vmatprep.subr.bf16.mxu1 %v1105_v33  ;;  %v575_v33 = vsel %vm99_vm1, %v1279_v4, %v1289_v44  ;;  %v555_v4 = vsel %vm80_vm0, %v1328_v62, %v1329_v18 }
 0x417   :  { %v631_v51 = vsel %vm156_vm4, %v1313_v34, %v1303_v20  ;;  %v593_v20 = vsel %vm118_vm2, %v1284_v0, %v1294_v63  ;;  %v1339_v0 = vunpack.i.h.bf16 %v2048_v28  ;;  %v1131_v62 = vpack.c.bf16 %v555_v4, %v1914_v29 }
 0x418   :  { %v1107_v43 = vpack.c.bf16 %v631_v51, %v613_v37  ;;  %v2063_v45 = vpop.permute.xlu1 %1321  ;;  %v611_v46 = vsel %vm137_vm3, %v1299_v8, %v1309_v30 }
 0x419   :  { %v1324_v17 = vunpack.i.h.bf16 %v2063_v45  ;;  %v1323_v12 = vunpack.i.l.bf16 %v2063_v45  ;;  %v596_v23 = vsel %vm118_vm2, %v1339_v0, %v1293_v32  ;;  %v591_v35 = vsel %vm118_vm2, %v1338_v40, %v1339_v0 }
 0x41a   :  { %1108 = vmatpush1.bf16.msra.mxu1 %v1107_v43  ;;  %v1119_v43 = vpack.c.bf16 %v593_v20, %v575_v33  ;;  %v629_v32 = vsel %vm156_vm4, %v1304_v42, %v1314_v16 }
 0x41b   :  { %v666_v19 = vsel %vm194_vm5, %v1323_v12, %v1324_v17 }
 0x41c   :  { %v2077_v2 = vpop.permute.xlu1 %651  ;;  %v1109_v22 = vpack.c.bf16 %v666_v19, %v648_v1  ;;  %v2123_v19 = vsel %vm695_vm9, %v1969_v41, %v1971_v49 }
 0x41d   :  { %v667_v61 = vsel %vm194_vm5, %v2077_v2, %v1323_v12  ;;  %v2105_v12 = vpop.permute.xlu0 %1351 }
 0x41e   :  { %v1111_v7 = vpack.c.bf16 %v667_v61, %v649_v25  ;;  %1110 = vmatprep.subr.bf16.mxu1 %v1109_v22  ;;  %v1344_v22 = vunpack.i.h.bf16 %v1342_v10  ;;  %v1343_v25 = vunpack.i.l.bf16 %v1342_v10  ;;  %v1353_v40 = vunpack.i.l.bf16 %v2105_v12 }
 0x420   :  { %v1332_v36 = vpop.permute.xlu1 %1331  ;;  %1112 = vmatpush1.bf16.msra.mxu1 %v1111_v7  ;;  %v1354_v7 = vunpack.i.h.bf16 %v2105_v12  ;;  %v610_v10 = vsel %vm137_vm3, %v1309_v30, %v1343_v25  ;;  %v609_v20 = vsel %vm137_vm3, %v1343_v25, %v1344_v22  ;;  %v647_v52 = vsel %vm175_vm6, %v1319_v38, %v1353_v40 }
 0x421   :  { %v1333_v11 = vunpack.i.l.bf16 %v1332_v36  ;;  %v1334_v37 = vunpack.i.h.bf16 %v1332_v36 }
 0x423   :  { %v574_v24 = vsel %vm99_vm1, %v1289_v44, %v1333_v11  ;;  %v578_v28 = vsel %vm99_vm1, %v1334_v37, %v1288_v3  ;;  %v573_v41 = vsel %vm99_vm1, %v1333_v11, %v1334_v37  ;;  %v644_v3 = vpop.permute.xlu0 %643 }
 0x424   :  { %v672_v48 = vpop.permute.xlu1 %671  ;;  %v1117_v51 = vpack.c.bf16 %v592_v26, %v574_v24  ;;  %v1133_v49 = vpack.c.bf16 %v596_v23, %v578_v28  ;;  %v1135_v44 = vpack.c.bf16 %v591_v35, %v573_v41  ;;  %v1123_v24 = vpack.c.bf16 %v629_v32, %v611_v46 }
 0x425   :  { %v684_v15 = vsel %vm213_vm7, %v672_v48, %v2067_v60  ;;  %v645_v55 = vsel %vm175_vm6, %v1354_v7, %v644_v3  ;;  %v650_v38 = vsel %vm175_vm6, %v644_v3, %v1993_v47 }
 0x426   :  { %715 = vmatprep.subr.mxu1 %v684_v15  ;;  %1118 = vmatprep.subr.bf16.mxu0 %v1117_v51 }
 0x427   :  { %1120 = vmatpush1.bf16.msra.mxu0 %v1119_v43  ;;  %v676_v37 = vpop.permute.xlu0 %675 }
 0x428   :  { %v2115_v1 = vpop.permute.xlu1 %669 }
 0x429   :  { %v685_v56 = vsel %vm213_vm7, %v2115_v1, %v672_v48 }
 0x42a   :  { %716 = vmatpush1.msra.mxu1 %v685_v56  ;;  %v58_v56 = vld [vmem:[#allocation7 + $0x1] ss:$2 sm:$0x3f] }
 0x42b   :  { %1046 = vmatmul.mubr.msk.f32.vlgmr.msra.gmra.mrb[2].mxu1 %vm225_vm8, %v2123_v19  ;;  %1130 = vmatprep.subr.bf16.mxu1 %v1129_v53  ;;  %v680_v58 = vpop.permute.xlu0 %679  ;;  %vm59_vm0 = vcmp.ne.f32.partialorder %v58_v56, 0.0 }
 0x42c   :  { %v1347_v29 = vpop.permute.xlu1 %1346  ;;  %1132 = vmatpush1.bf16.msra.mxu1 %v1131_v62  ;;  %905 = vmatprep.mubr.f32.mxu1 %v1497_v9  ;;  %v614_v9 = vsel %vm137_vm3, %v1344_v22, %v1308_v21  ;;  %v686_v47 = vsel %vm213_vm7, %v680_v58, %v2115_v1  ;;  %v912_v62 = vsel %vm59_vm0, 1, %v1500_v59 }
 0x42d   :  { %v1349_v61 = vunpack.i.h.bf16 %v1347_v29  ;;  %v1348_v63 = vunpack.i.l.bf16 %v1347_v29  ;;  %1134 = vmatprep.subr.bf16.mxu1 %v1133_v49  ;;  %v916_v22 = vrot.slane %v912_v62, %v445_v27  ;;  %v920_v14 = vrot.slane %v912_v62, %v449_v50 }
 0x42e   :  { %v928_v41 = vrot.slane %v912_v62, %v457_v13  ;;  %v932_v27 = vrot.slane %v912_v62, %v461_v6 }
 0x42f   :  { %v627_v39 = vsel %vm156_vm4, %v1348_v63, %v1349_v61  ;;  %v628_v42 = vsel %vm156_vm4, %v1314_v16, %v1348_v63  ;;  %v632_v36 = vsel %vm156_vm4, %v1349_v61, %v1313_v34  ;;  %v646_v34 = vsel %vm175_vm6, %v1353_v40, %v1354_v7 }
 0x430   :  { %v1357_v11 = vpop.permute.xlu1 %1356  ;;  %1136 = vmatpush1.bf16.msra.mxu1 %v1135_v44  ;;  %v1121_v21 = vpack.c.bf16 %v628_v42, %v610_v10  ;;  %v1137_v18 = vpack.c.bf16 %v632_v36, %v614_v9  ;;  %v1139_v57 = vpack.c.bf16 %v627_v39, %v609_v20  ;;  %v683_v16 = vsel %vm213_vm7, %v2067_v60, %v676_v37 }
 0x431   :  { %v1359_v26 = vunpack.i.h.bf16 %v1357_v11  ;;  %v1358_v33 = vunpack.i.l.bf16 %v1357_v11  ;;  %vm937_vm1 = vcmp.eq.s32.totalorder %v916_v22, 1  ;;  %vm938_vm2 = vcmp.eq.s32.totalorder %v920_v14, 1 }
 0x432   :  { %1122 = vmatprep.subr.bf16.mxu0 %v1121_v21  ;;  %1138 = vmatprep.subr.bf16.mxu1 %v1137_v18  ;;  %vm940_vm4 = vcmp.eq.s32.totalorder %v928_v41, 1 }
 0x433   :  { %v665_v8 = vsel %vm194_vm5, %v1324_v17, %v1358_v33  ;;  %1124 = vmatpush1.bf16.msra.mxu0 %v1123_v24  ;;  %v664_v48 = vsel %vm194_vm5, %v1358_v33, %v1359_v26 }
 0x434   :  { %v1127_v51 = vpack.c.bf16 %v665_v8, %v647_v52  ;;  %v662_v43 = vpop.permute.xlu1 %661  ;;  %1140 = vmatpush1.bf16.msra.mxu1 %v1139_v57  ;;  %v1125_v15 = vpack.c.bf16 %v664_v48, %v646_v34 }
 0x435   :  { %v663_v45 = vsel %vm194_vm5, %v1359_v26, %v662_v43  ;;  %v668_v17 = vsel %vm194_vm5, %v662_v43, %v2077_v2  ;;  %vm941_vm5 = vcmp.eq.s32.totalorder %v932_v27, 1 }
 0x436   :  { %v1141_v0 = vpack.c.bf16 %v668_v17, %v650_v38  ;;  %v1143_v12 = vpack.c.bf16 %v663_v45, %v645_v55  ;;  %1126 = vmatprep.subr.bf16.mxu0 %v1125_v15 }
 0x437   :  { %1128 = vmatpush1.bf16.msra.mxu0 %v1127_v51 }
 0x438   :  { %v678_v4 = vpop.permute.xlu1 %677  ;;  %1142 = vmatprep.subr.bf16.mxu1 %v1141_v0 }
 0x439   :  { %1144 = vmatpush1.bf16.msra.mxu1 %v1143_v12  ;;  %v682_v28 = vsel %vm213_vm7, %v676_v37, %v678_v4  ;;  %v681_v2 = vsel %vm213_vm7, %v678_v4, %v680_v58  ;;  %v1505_v12 = vmov 20   ;;  %v1506_v58 = vmov 21   ;;  %v1368_v4 = vld [vmem:[#allocation5 + $0x8] sm:$0xff] }
 0x43a   :  { %786 = vmatprep.subr.mxu0 %v682_v28  ;;  %857 = vmatprep.subr.mxu1 %v686_v47 }
 0x43b   :  { %787 = vmatpush1.msra.mxu0 %v683_v16  ;;  %1361 = vset.pattern.permute.xlu0 %v1505_v12 }
 0x43c   :  { %1047 = vmatmul.mubr.msk.f32.vlgmr.msra.gmra.mrb[4].mxu0 %vm225_vm8, %v2123_v19  ;;  %1362 = vset.pattern.permute.xlu1 %v1506_v58 }
 0x43d   :  { %858 = vmatpush1.msra.mxu1 %v681_v2 }
 0x43e   :  { %1048 = vmatmul.mubr.msk.f32.vlgmr.msra.gmra.mrb[4].mxu1 %vm225_vm8, %v2123_v19  ;;  %v924_v19 = vrot.slane %v912_v62, %v453_v31  ;;  %v936_v31 = vrot.slane %v912_v62, %v465_v5 }
 0x440   :  { %vm939_vm3 = vcmp.eq.s32.totalorder %v924_v19, 1  ;;  %vm942_vm6 = vcmp.eq.s32.totalorder %v936_v31, 1 }
 0x449   :  { %v689_v60 = vpop.permute.xlu1 %688 }
 0x4fe   :  { %v765_v53 = vpop.f32.mrb[2].mxu1 }
 0x4ff   :  { %v767_v1 = vpop.f32.mrb[3].mxu1  ;;  %v766_v25 = vadd.f32 %v765_v53, %v689_v60 }
 0x500   :  { %v768_v23 = vadd.f32 %v767_v1, %v689_v60 }
 0x501   :  { %v943_v49 = vsel %vm937_vm1, %v766_v25, 0.0 }
 0x502   :  { %v944_v59 = vsel %vm938_vm2, %v768_v23, 0.0 }
 0x503   :  { %v949_v29 = vadd.f32 %v944_v59, %v943_v49 }
 0x50f   :  { %v836_v30 = vpop.f32.mrb[4].mxu0 }
 0x510   :  { %v837_v50 = vadd.f32 %v836_v30, %v689_v60  ;;  %v838_v3 = vpop.f32.mrb[5].mxu0 }
 0x511   :  { %v839_v35 = vadd.f32 %v838_v3, %v689_v60  ;;  %v907_v32 = vpop.f32.mrb[4].mxu1 }
 0x512   :  { %v945_v13 = vsel %vm939_vm3, %v837_v50, 0.0  ;;  %v908_v61 = vadd.f32 %v907_v32, %v689_v60  ;;  %v909_v63 = vpop.f32.mrb[5].mxu1 }
 0x513   :  { %v950_v7 = vadd.f32 %v949_v29, %v945_v13  ;;  %v946_v44 = vsel %vm940_vm4, %v839_v35, 0.0  ;;  %v910_v10 = vadd.f32 %v909_v63, %v689_v60 }
 0x514   :  { %v947_v6 = vsel %vm941_vm5, %v908_v61, 0.0 }
 0x515   :  { %v951_v9 = vadd.f32 %v950_v7, %v946_v44  ;;  %v948_v39 = vsel %vm942_vm6, %v910_v10, 0.0 }
 0x517   :  { %v952_v40 = vadd.f32 %v951_v9, %v947_v6 }
 0x519   :  { %v953_v42 = vadd.f32 %v952_v40, %v948_v39 }
 0x51b   :  { %954 = vadd.xlane.f32.xlu0 %v953_v42 }
 0x5a8   :  { %v955_v54 = vpop.xlane.xlu0 %954 }
 0x5a9   :  { %v956_v5 = vmul.f32 0.0025510204, %v955_v54 }
 0x5ab   :  { %v957_v36 = vsub.f32 %v766_v25, %v956_v5  ;;  %v958_v46 = vsub.f32 %v768_v23, %v956_v5  ;;  %v959_v11 = vsub.f32 %v837_v50, %v956_v5  ;;  %v960_v21 = vsub.f32 %v839_v35, %v956_v5 }
 0x5ac   :  { %v961_v18 = vsub.f32 %v908_v61, %v956_v5  ;;  %v962_v33 = vsub.f32 %v910_v10, %v956_v5 }
 0x5ad   :  { %v963_v20 = vmul.f32 %v957_v36, %v957_v36  ;;  %v964_v24 = vmul.f32 %v958_v46, %v958_v46  ;;  %v965_v26 = vmul.f32 %v959_v11, %v959_v11  ;;  %v966_v37 = vmul.f32 %v960_v21, %v960_v21 }
 0x5ae   :  { %v967_v34 = vmul.f32 %v961_v18, %v961_v18  ;;  %v968_v43 = vmul.f32 %v962_v33, %v962_v33 }
 0x5af   :  { %v969_v57 = vsel %vm937_vm1, %v963_v20, 0.0  ;;  %v970_v52 = vsel %vm938_vm2, %v964_v24, 0.0  ;;  %v971_v48 = vsel %vm939_vm3, %v965_v26, 0.0  ;;  %v972_v15 = vsel %vm940_vm4, %v966_v37, 0.0 }
 0x5b0   :  { %v975_v8 = vadd.f32 %v970_v52, %v969_v57  ;;  %v973_v38 = vsel %vm941_vm5, %v967_v34, 0.0  ;;  %v974_v17 = vsel %vm942_vm6, %v968_v43, 0.0 }
 0x5b2   :  { %v976_v51 = vadd.f32 %v975_v8, %v971_v48 }
 0x5b4   :  { %v977_v55 = vadd.f32 %v976_v51, %v972_v15 }
 0x5b6   :  { %v978_v45 = vadd.f32 %v977_v55, %v973_v38 }
 0x5b8   :  { %v979_v0 = vadd.f32 %v978_v45, %v974_v17 }
 0x5ba   :  { %980 = vadd.xlane.f32.xlu1 %v979_v0 }
 0x5cb   :  { %998 = vperm.xlu1 %1362, %v1368_v4  }
 0x647   :  { %v981_v28 = vpop.xlane.xlu1 %980 }
 0x648   :  { %v982_v47 = vmul.f32 0.0025510204, %v981_v28 }
 0x64a   :  { %v983_v16 = vadd.f32 1e-05, %v982_v47 }
 0x64c   :  { %1366 = vrsqrt.f32 %v983_v16 }
 0x656   :  { %v1367_v2 = vpop.eup %1366 }
 0x657   :  { %v985_v56 = vmul.f32 %v1368_v4, %v1367_v2 }
 0x659   :  { %988 = vperm.xlu0 %1361, %v985_v56  }
 0x65d   :  { %1363 = vset.pattern.permute.xlu0 %v1506_v58 }
 0x65e   :  { %1446 = shalt.err (!%p1443_p0)
}
 0x65f   :  { %s1447_s10 = scalar_lea.hbm %s2257_s3, 768 }
 0x660   :  { %p1448_p1 = scmp.ne.s32.totalorder %s2257_s3, %s1447_s10  ;;  %p1451_p2 = scmp.lt.u32.totalorder %s1447_s10, %s2257_s3 }
 0x662   :  { %p1453_p3 = pnand %p1451_p2, %p1448_p1 }
 0x664   :  { %1456 = shalt.err (!%p1453_p3)
}
 0x665   :  { %1022 = dma.vmem_to_hbm [thread:$0]  %s1020_s6, 768, %s2257_s3, [#allocation4]   ;;  %v999_v1 = vpop.permute.xlu1 %998 }
 0x666   :  { %s1508_s16 = smov [#allocation9]  }
 0x667   :  { %s1029_s17 = sshll.u32 %s1508_s16, 4  ;;  %s1030_s17 = int_to_ptr.vmem [resolvable:$true] %s1029_s17 }
 0x668   :  { %s1457_s3 = scalar_lea.vmem %s1030_s17, 768  ;;  %p1462_p5 = scmp.lt.s32.totalorder %s1030_s17, %s1030_s17 }
 0x669   :  { %p1458_p4 = scmp.ne.s32.totalorder %s1030_s17, %s1457_s3  ;;  %p1463_p6 = scmp.lt.s32.totalorder %s1457_s3, %s1457_s3 }
 0x66b   :  { %p1464_p7 = por %p1463_p6, %p1462_p5 }
 0x66d   :  { %p1465_p8 = pnand %p1464_p7, %p1458_p4 }
 0x6d8   :  { %v989_v53 = vpop.permute.xlu0 %988 }
 0x6d9   :  { %v991_v62 = vmul.f32 %v989_v53, %v957_v36  ;;  %v992_v60 = vmul.f32 %v989_v53, %v958_v46  ;;  %v993_v22 = vmul.f32 %v989_v53, %v959_v11  ;;  %v994_v14 = vmul.f32 %v989_v53, %v960_v21 }
 0x6da   :  { %v995_v25 = vmul.f32 %v989_v53, %v961_v18  ;;  %v996_v23 = vmul.f32 %v989_v53, %v962_v33 }
 0x6db   :  { %v1001_v19 = vadd.f32 %v999_v1, %v991_v62  ;;  %v1002_v41 = vadd.f32 %v999_v1, %v992_v60  ;;  %v1003_v49 = vadd.f32 %v999_v1, %v993_v22  ;;  %v1004_v59 = vadd.f32 %v999_v1, %v994_v14 }
 0x6dc   :  { %v1005_v30 = vadd.f32 %v999_v1, %v995_v25  ;;  %v1006_v27 = vadd.f32 %v999_v1, %v996_v23 }
 0x6dd   :  { %1007 = vst [vmem:[#allocation9] sm:$0xff] %v1001_v19  ;;  %1008 = vst [vmem:[#allocation9 + $0x8] sm:$0xff] %v1002_v41 }
 0x6de   :  { %1009 = vst [vmem:[#allocation9 + $0x10] sm:$0xff] %v1003_v49  ;;  %1010 = vst [vmem:[#allocation9 + $0x18] sm:$0xff] %v1004_v59 }
 0x6df   :  { %1011 = vst [vmem:[#allocation9 + $0x20] sm:$0xff] %v1005_v30  ;;  %1012 = vst [vmem:[#allocation9 + $0x28] sm:$0xff] %v1006_v27 }
 0x6e0   :  { %1468 = shalt.err (!%p1465_p8)
}
 0x6e1   :  { %s1469_s21 = scalar_lea.hbm %s2258_s4, 768 }
 0x6e2   :  { %p1470_p9 = scmp.ne.s32.totalorder %s2258_s4, %s1469_s21  ;;  %p1473_p10 = scmp.lt.u32.totalorder %s1469_s21, %s2258_s4 }
 0x6e4   :  { %p1475_p11 = pnand %p1473_p10, %p1470_p9 }
 0x6e6   :  { %1478 = shalt.err (!%p1475_p11)
}
 0x6e7   :  { %1032 = dma.vmem_to_hbm [thread:$0]  %s1030_s17, 768, %s2258_s4, [#allocation10]  }
 0x6e8   :  { %1483 = dma.done.wait [#allocation4], 768  }
 0x6e9   :  { %1484 = vsyncadd [#allocation4], 4294966528 }
 0x6ea   :  { %1485 = dma.done.wait [#allocation10], 768  }
 0x6eb   :  { %1486 = vsyncadd [#allocation10], 4294966528 }
 0x6ec   :  { %1039 = vsyncpa [#allocation3], 1 }
 0x6ed   :  { %1040 = vsyncpa [#allocation6], 1 }
 0x6ee   :  { %1041 = vsyncpa [#allocation4], 1 }
 0x6ef   :  { %1042 = vsyncpa [#allocation10], 1 }

</bundles_post_ra>
